<compile_context>
chip_gen: v5e
topology: v5e:2x2
jax: 0.10.0
libtpu: 0.0.40
codegen_flags: <defaults>
</compile_context>

<pallas_src>
import math

import jax
import jax.numpy as jnp
from jax.experimental import pallas as pl
from jax.experimental.pallas import tpu as pltpu


def mha_kernel(q_ref, k_ref, v_ref, wq_ref, bq_ref, wo_ref, bo_ref, o_ref, acc_ref):
    """One (batch, query-tile, head) grid step.

    q_ref : (1, tq, D)  query rows            (compute dtype: f32 or bf16)
    k_ref : (1, Sk, D)  full key sequence
    v_ref : (1, Sk, D)  full value sequence
    wq_ref: (1, D, D)   this head's q-projection weight (stored as x @ W)
    bq_ref: (1, 1, D)   this head's q-projection bias   (f32)
    wo_ref: (1, D, D)   this head's slice of the output projection (transposed)
    bo_ref: (1, D)      output projection bias          (f32)
    o_ref : (1, tq, D)  output tile
    acc_ref: (tq, D) f32 accumulator over heads (VMEM scratch)
    """
    h_idx = pl.program_id(2)
    cdt = q_ref.dtype                      # MXU operand dtype (bf16 or f32)
    d_model = q_ref.shape[-1]
    inv_scale = 1.0 / math.sqrt(d_model)

    wq = wq_ref[0]                         # (D, D)
    bq = bq_ref[0]                         # (1, D) f32

    # NOTE: the PyTorch forward projects query, key AND value through self.q.
    q = jnp.dot(q_ref[0], wq, preferred_element_type=jnp.float32) + bq   # (tq, D) f32
    k = jnp.dot(k_ref[0], wq, preferred_element_type=jnp.float32) + bq   # (Sk, D) f32
    v = jnp.dot(v_ref[0], wq, preferred_element_type=jnp.float32) + bq   # (Sk, D) f32

    # scores = Q K^T / sqrt(D); MXU operands in `cdt`, f32 accumulation.
    scores = jnp.dot(q.astype(cdt), k.astype(cdt).T,
                     preferred_element_type=jnp.float32) * inv_scale     # (tq, Sk)

    # Numerically stable softmax over the key axis (f32, EUP exp).
    m = jnp.max(scores, axis=-1, keepdims=True)
    p = jnp.exp(scores - m)
    p = p / jnp.sum(p, axis=-1, keepdims=True)

    head = jnp.dot(p.astype(cdt), v.astype(cdt),
                   preferred_element_type=jnp.float32)                   # (tq, D)

    # This head's share of   concat_h(head_h) @ W_out^T  ==  sum_h head_h @ Wo_h
    contrib = jnp.dot(head.astype(cdt), wo_ref[0],
                      preferred_element_type=jnp.float32)                # (tq, D)

    # Fold the output bias into the accumulator init (no per-step broadcast).
    @pl.when(h_idx == 0)
    def _init():
        acc_ref[...] = jnp.broadcast_to(bo_ref[...], acc_ref.shape).astype(jnp.float32)

    acc_ref[...] += contrib

    @pl.when(h_idx == pl.num_programs(2) - 1)
    def _finalize():
        o_ref[0] = acc_ref[...].astype(o_ref.dtype)


def multi_head_attention(query, key, value, wq, bq, wo, bo, *,
                         tq=256, compute_dtype=None):
    """query: (B, Sq, D); key/value: (B, Sk, D).

    wq: (H, D, D) per-head q-projection weights, stored transposed (x @ wq[h]).
    bq: (H, 1, D) per-head q-projection biases.
    wo: (H, D, D) per-head slices of the output projection, stored transposed
                  (wo[h] == W_out[:, h*D:(h+1)*D].T).
    bo: (1, D)    output projection bias.
    compute_dtype: MXU operand dtype; jnp.bfloat16 ~2x MXU throughput and halves
                   weight/activation DMA bytes (accumulation stays f32).
    """
    B, Sq, D = query.shape
    _, Sk, _ = key.shape
    H = wq.shape[0]
    out_dtype = query.dtype
    if compute_dtype is None:
        compute_dtype = query.dtype

    # Large query-row tile; fall back to the full sequence when it doesn't
    # divide evenly (small shapes).
    # TODO(synk): pad / mask a partial last tile for awkward production Sq.
    tq = min(tq, Sq)
    if Sq % tq != 0:
        tq = Sq

    q_in = query.astype(compute_dtype)
    k_in = key.astype(compute_dtype)
    v_in = value.astype(compute_dtype)
    wq_in = wq.astype(compute_dtype)
    wo_in = wo.astype(compute_dtype)
    bq_in = bq.astype(jnp.float32)
    bo_in = bo.astype(jnp.float32)

    itemsize = jnp.dtype(compute_dtype).itemsize
    flops = int(B * H * (4 * Sq * Sk * D + 4 * D * D * (Sq + Sk)))
    bytes_accessed = int(
        (q_in.size + k_in.size + v_in.size + wq_in.size + wo_in.size) * itemsize
        + (bq_in.size + bo_in.size) * 4
        + B * Sq * D * jnp.dtype(out_dtype).itemsize)
    cost = pl.CostEstimate(flops=flops,
                           transcendentals=int(B * H * Sq * Sk),
                           bytes_accessed=bytes_accessed)

    grid = (B, Sq // tq, H)   # heads (reduction) axis last

    out = pl.pallas_call(
        mha_kernel,
        out_shape=jax.ShapeDtypeStruct((B, Sq, D), out_dtype),
        grid_spec=pltpu.PrefetchScalarGridSpec(
            num_scalar_prefetch=0,
            grid=grid,
            in_specs=[
                pl.BlockSpec((1, tq, D), lambda b, s, h: (b, s, 0)),  # query tile
                pl.BlockSpec((1, Sk, D), lambda b, s, h: (b, 0, 0)),  # key (full seq)
                pl.BlockSpec((1, Sk, D), lambda b, s, h: (b, 0, 0)),  # value (full seq)
                pl.BlockSpec((1, D, D), lambda b, s, h: (h, 0, 0)),   # Wq[h]
                pl.BlockSpec((1, 1, D), lambda b, s, h: (h, 0, 0)),   # bq[h]
                pl.BlockSpec((1, D, D), lambda b, s, h: (h, 0, 0)),   # Wo[h]
                pl.BlockSpec((1, D), lambda b, s, h: (0, 0)),         # bo
            ],
            out_specs=pl.BlockSpec((1, tq, D), lambda b, s, h: (b, s, 0)),
            scratch_shapes=[pltpu.VMEM((tq, D), jnp.float32)],
        ),
        compiler_params=pltpu.CompilerParams(
            # batch & query tiles shard across TensorCores (v7x megacore);
            # heads axis carries the output accumulator -> "arbitrary".
            dimension_semantics=("parallel", "parallel", "arbitrary"),
        ),
        cost_estimate=cost,
    )(q_in, k_in, v_in, wq_in, bq_in, wo_in, bo_in)

    return out


def init_params(key, num_heads, dim_model):
    """nn.Linear-style init, stored in the stacked/transposed kernel layout."""
    kwq, kbq, kwo, kbo = jax.random.split(key, 4)
    bound_q = 1.0 / math.sqrt(dim_model)
    bound_o = 1.0 / math.sqrt(num_heads * dim_model)
    wq = jax.random.uniform(kwq, (num_heads, dim_model, dim_model),
                            jnp.float32, -bound_q, bound_q)
    bq = jax.random.uniform(kbq, (num_heads, 1, dim_model),
                            jnp.float32, -bound_q, bound_q)
    wo = jax.random.uniform(kwo, (num_heads, dim_model, dim_model),
                            jnp.float32, -bound_o, bound_o)
    bo = jax.random.uniform(kbo, (1, dim_model),
                            jnp.float32, -bound_o, bound_o)
    return wq, bq, wo, bo


def mha_ref(query, key, value, wq, bq, wo, bo):
    """Pure-JAX reference matching the PyTorch forward (concat form)."""
    H, D, _ = wq.shape
    heads = []
    for h in range(H):
        qh = query @ wq[h] + bq[h]
        kh = key @ wq[h] + bq[h]      # key/value also use the q projection
        vh = value @ wq[h] + bq[h]
        s = jnp.einsum("bqd,bkd->bqk", qh, kh) / math.sqrt(D)
        p = jax.nn.softmax(s, axis=-1)
        heads.append(jnp.einsum("bqk,bkd->bqd", p, vh))
    cat = jnp.concatenate(heads, axis=-1)          # (B, Sq, H*D)
    w_cat = jnp.concatenate(list(wo), axis=0)      # (H*D, D) == W_out.T
    return cat @ w_cat + bo


if __name__ == "__main__":
    # Small shapes consistent with the module: batch=2, seq=8, heads=4, dim_model=32.
    B, S, H, D = 2, 8, 4, 32

    root = jax.random.PRNGKey(0)
    kq, kk, kv, kp = jax.random.split(root, 4)
    q_inp = jax.random.normal(kq, (B, S, D), dtype=jnp.float32)
    k_inp = jax.random.normal(kk, (B, S, D), dtype=jnp.float32)
    v_inp = jax.random.normal(kv, (B, S, D), dtype=jnp.float32)
    wq, bq, wo, bo = init_params(kp, H, D)

    ref = mha_ref(q_inp, k_inp, v_inp, wq, bq, wo, bo)

    # f32 path (strict check).
    out_f32 = multi_head_attention(q_inp, k_inp, v_inp, wq, bq, wo, bo)
    out_f32 = jax.block_until_ready(out_f32)
    assert out_f32.shape == (B, S, D)
    assert jnp.allclose(out_f32, ref, atol=1e-4, rtol=1e-4)

    # bf16 MXU operands with f32 accumulation (perf path) -> looser tolerance.
    out_bf16 = multi_head_attention(q_inp, k_inp, v_inp, wq, bq, wo, bo,
                                    compute_dtype=jnp.bfloat16)
    out_bf16 = jax.block_until_ready(out_bf16)
    assert out_bf16.shape == (B, S, D)
    assert jnp.allclose(out_bf16, ref, atol=5e-2, rtol=5e-2)

    print("KERNEL_OK")
</pallas_src>

<mosaic_0001>
module attributes {stable_mosaic.version = 11 : i64} {
  func.func @mha_kernel(%arg0: i32, %arg1: i32, %arg2: i32, %arg3: memref<1x8x32xf32, #tpu.memory_space<vmem>>, %arg4: memref<1x8x32xf32, #tpu.memory_space<vmem>>, %arg5: memref<1x8x32xf32, #tpu.memory_space<vmem>>, %arg6: memref<1x32x32xf32, #tpu.memory_space<vmem>>, %arg7: memref<1x1x32xf32, #tpu.memory_space<vmem>>, %arg8: memref<1x32x32xf32, #tpu.memory_space<vmem>>, %arg9: memref<1x32xf32, #tpu.memory_space<vmem>>, %arg10: memref<1x8x32xf32, #tpu.memory_space<vmem>>, %arg11: memref<8x32xf32, #tpu.memory_space<vmem>>) attributes {dimension_semantics = [#tpu.dimension_semantics<parallel>, #tpu.dimension_semantics<parallel>, #tpu.dimension_semantics<arbitrary>], iteration_bounds = array<i64: 2, 1, 4>, scalar_prefetch = 0 : i64, scratch_operands = 1 : i64, tpu.core_type = #tpu.core_type<tc>, window_params = [{transform_indices = @transform_0, window_bounds = array<i64: 1, 8, 32>}, {transform_indices = @transform_1, window_bounds = array<i64: 1, 8, 32>}, {transform_indices = @transform_2, window_bounds = array<i64: 1, 8, 32>}, {transform_indices = @transform_3, window_bounds = array<i64: 1, 32, 32>}, {transform_indices = @transform_4, window_bounds = array<i64: 1, 1, 32>}, {transform_indices = @transform_5, window_bounds = array<i64: 1, 32, 32>}, {pipeline_mode = #tpu.pipeline_mode<synchronous>, transform_indices = @transform_6, window_bounds = array<i64: 1, 32>}, {transform_indices = @transform_7, window_bounds = array<i64: 1, 8, 32>}]} {
    %c0 = arith.constant 0 : index
    %c0_0 = arith.constant 0 : index
    %c0_1 = arith.constant 0 : index
    %0 = vector.load %arg6[%c0, %c0_0, %c0_1] : memref<1x32x32xf32, #tpu.memory_space<vmem>>, vector<1x32x32xf32>
    %1 = vector.shape_cast %0 : vector<1x32x32xf32> to vector<32x32xf32>
    %c0_2 = arith.constant 0 : index
    %c0_3 = arith.constant 0 : index
    %c0_4 = arith.constant 0 : index
    %2 = vector.load %arg7[%c0_2, %c0_3, %c0_4] : memref<1x1x32xf32, #tpu.memory_space<vmem>>, vector<1x1x32xf32>
    %3 = vector.shape_cast %2 : vector<1x1x32xf32> to vector<1x32xf32>
    %c0_5 = arith.constant 0 : index
    %c0_6 = arith.constant 0 : index
    %c0_7 = arith.constant 0 : index
    %4 = vector.load %arg3[%c0_5, %c0_6, %c0_7] : memref<1x8x32xf32, #tpu.memory_space<vmem>>, vector<1x8x32xf32>
    %5 = vector.shape_cast %4 : vector<1x8x32xf32> to vector<8x32xf32>
    %cst = arith.constant dense<0.000000e+00> : vector<8x32xf32>
    %6 = tpu.matmul %5, %1, %cst {dimension_numbers = #tpu.dot_dimension_numbers<[1], [0], [0], [1], [0, 0, 1, 1], [], []>} : vector<8x32xf32>, vector<32x32xf32>, vector<8x32xf32> -> vector<8x32xf32>
    %7 = vector.broadcast %3 : vector<1x32xf32> to vector<8x32xf32>
    %8 = arith.addf %6, %7 : vector<8x32xf32>
    %c0_8 = arith.constant 0 : index
    %c0_9 = arith.constant 0 : index
    %c0_10 = arith.constant 0 : index
    %9 = vector.load %arg4[%c0_8, %c0_9, %c0_10] : memref<1x8x32xf32, #tpu.memory_space<vmem>>, vector<1x8x32xf32>
    %10 = vector.shape_cast %9 : vector<1x8x32xf32> to vector<8x32xf32>
    %cst_11 = arith.constant dense<0.000000e+00> : vector<8x32xf32>
    %11 = tpu.matmul %10, %1, %cst_11 {dimension_numbers = #tpu.dot_dimension_numbers<[1], [0], [0], [1], [0, 0, 1, 1], [], []>} : vector<8x32xf32>, vector<32x32xf32>, vector<8x32xf32> -> vector<8x32xf32>
    %12 = vector.broadcast %3 : vector<1x32xf32> to vector<8x32xf32>
    %13 = arith.addf %11, %12 : vector<8x32xf32>
    %c0_12 = arith.constant 0 : index
    %c0_13 = arith.constant 0 : index
    %c0_14 = arith.constant 0 : index
    %14 = vector.load %arg5[%c0_12, %c0_13, %c0_14] : memref<1x8x32xf32, #tpu.memory_space<vmem>>, vector<1x8x32xf32>
    %15 = vector.shape_cast %14 : vector<1x8x32xf32> to vector<8x32xf32>
    %cst_15 = arith.constant dense<0.000000e+00> : vector<8x32xf32>
    %16 = tpu.matmul %15, %1, %cst_15 {dimension_numbers = #tpu.dot_dimension_numbers<[1], [0], [0], [1], [0, 0, 1, 1], [], []>} : vector<8x32xf32>, vector<32x32xf32>, vector<8x32xf32> -> vector<8x32xf32>
    %17 = vector.broadcast %3 : vector<1x32xf32> to vector<8x32xf32>
    %18 = arith.addf %16, %17 : vector<8x32xf32>
    %19 = tpu.transpose %13, [1, 0] : vector<8x32xf32> -> vector<32x8xf32>
    %cst_16 = arith.constant dense<0.000000e+00> : vector<8x8xf32>
    %20 = tpu.matmul %8, %19, %cst_16 {dimension_numbers = #tpu.dot_dimension_numbers<[1], [0], [0], [1], [0, 0, 1, 1], [], []>} : vector<8x32xf32>, vector<32x8xf32>, vector<8x8xf32> -> vector<8x8xf32>
    %cst_17 = arith.constant 0.176776692 : f32
    %21 = vector.broadcast %cst_17 : f32 to vector<8x8xf32>
    %22 = arith.mulf %20, %21 : vector<8x8xf32>
    %cst_18 = arith.constant dense<0xFF800000> : vector<8xf32>
    %23 = vector.multi_reduction <maximumf>, %22, %cst_18 [1] : vector<8x8xf32> to vector<8xf32>
    %24 = vector.shape_cast %23 : vector<8xf32> to vector<8x1xf32>
    %25 = vector.broadcast %24 : vector<8x1xf32> to vector<8x8xf32>
    %26 = arith.subf %22, %25 : vector<8x8xf32>
    %27 = math.exp %26 : vector<8x8xf32>
    %cst_19 = arith.constant dense<0.000000e+00> : vector<8xf32>
    %28 = vector.multi_reduction <add>, %27, %cst_19 [1] : vector<8x8xf32> to vector<8xf32>
    %29 = vector.shape_cast %28 : vector<8xf32> to vector<8x1xf32>
    %30 = vector.broadcast %29 : vector<8x1xf32> to vector<8x8xf32>
    %31 = arith.divf %27, %30 : vector<8x8xf32>
    %cst_20 = arith.constant dense<0.000000e+00> : vector<8x32xf32>
    %32 = tpu.matmul %31, %18, %cst_20 {dimension_numbers = #tpu.dot_dimension_numbers<[1], [0], [0], [1], [0, 0, 1, 1], [], []>} : vector<8x8xf32>, vector<8x32xf32>, vector<8x32xf32> -> vector<8x32xf32>
    %c0_21 = arith.constant 0 : index
    %c0_22 = arith.constant 0 : index
    %c0_23 = arith.constant 0 : index
    %33 = vector.load %arg8[%c0_21, %c0_22, %c0_23] : memref<1x32x32xf32, #tpu.memory_space<vmem>>, vector<1x32x32xf32>
    %34 = vector.shape_cast %33 : vector<1x32x32xf32> to vector<32x32xf32>
    %cst_24 = arith.constant dense<0.000000e+00> : vector<8x32xf32>
    %35 = tpu.matmul %32, %34, %cst_24 {dimension_numbers = #tpu.dot_dimension_numbers<[1], [0], [0], [1], [0, 0, 1, 1], [], []>} : vector<8x32xf32>, vector<32x32xf32>, vector<8x32xf32> -> vector<8x32xf32>
    %c0_i32 = arith.constant 0 : i32
    %36 = arith.cmpi eq, %arg2, %c0_i32 : i32
    %37 = arith.extui %36 : i1 to i32
    %c0_i32_25 = arith.constant 0 : i32
    %38 = arith.cmpi ne, %37, %c0_i32_25 : i32
    scf.if %38 {
      %c0_31 = arith.constant 0 : index
      %c0_32 = arith.constant 0 : index
      %45 = vector.load %arg9[%c0_31, %c0_32] : memref<1x32xf32, #tpu.memory_space<vmem>>, vector<1x32xf32>
      %46 = vector.shape_cast %45 : vector<1x32xf32> to vector<1x32xf32>
      %47 = vector.broadcast %46 : vector<1x32xf32> to vector<8x32xf32>
      %c0_33 = arith.constant 0 : index
      %c0_34 = arith.constant 0 : index
      %48 = vector.load %arg11[%c0_33, %c0_34] : memref<8x32xf32, #tpu.memory_space<vmem>>, vector<8x32xf32>
      tpu.vector_store %arg11[%c0_33, %c0_34], %47 {strides = array<i32>} : memref<8x32xf32, #tpu.memory_space<vmem>>, vector<8x32xf32>,
    } else {
    }
    %c0_26 = arith.constant 0 : index
    %c0_27 = arith.constant 0 : index
    %39 = vector.load %arg11[%c0_26, %c0_27] : memref<8x32xf32, #tpu.memory_space<vmem>>, vector<8x32xf32>
    %40 = arith.addf %39, %35 : vector<8x32xf32>
    %c0_28 = arith.constant 0 : index
    %c0_29 = arith.constant 0 : index
    %41 = vector.load %arg11[%c0_28, %c0_29] : memref<8x32xf32, #tpu.memory_space<vmem>>, vector<8x32xf32>
    tpu.vector_store %arg11[%c0_28, %c0_29], %40 {strides = array<i32>} : memref<8x32xf32, #tpu.memory_space<vmem>>, vector<8x32xf32>,
    %c3_i32 = arith.constant 3 : i32
    %42 = arith.cmpi eq, %arg2, %c3_i32 : i32
    %43 = arith.extui %42 : i1 to i32
    %c0_i32_30 = arith.constant 0 : i32
    %44 = arith.cmpi ne, %43, %c0_i32_30 : i32
    scf.if %44 {
      %c0_31 = arith.constant 0 : index
      %c0_32 = arith.constant 0 : index
      %45 = vector.load %arg11[%c0_31, %c0_32] : memref<8x32xf32, #tpu.memory_space<vmem>>, vector<8x32xf32>
      %c0_33 = arith.constant 0 : index
      %c0_34 = arith.constant 0 : index
      %c0_35 = arith.constant 0 : index
      %46 = vector.load %arg10[%c0_33, %c0_34, %c0_35] : memref<1x8x32xf32, #tpu.memory_space<vmem>>, vector<1x8x32xf32>
      %47 = vector.shape_cast %46 : vector<1x8x32xf32> to vector<8x32xf32>
      %48 = vector.shape_cast %45 : vector<8x32xf32> to vector<1x8x32xf32>
      tpu.vector_store %arg10[%c0_33, %c0_34, %c0_35], %48 {strides = array<i32>} : memref<1x8x32xf32, #tpu.memory_space<vmem>>, vector<1x8x32xf32>,
    } else {
    }
    return
  }
  func.func @transform_0(%arg0: i32, %arg1: i32, %arg2: i32) -> (i32, i32, i32) {
    %c0_i32 = arith.constant 0 : i32
    %c0_i32_0 = arith.constant 0 : i32
    return %arg0, %arg1, %c0_i32 : i32, i32, i32
  }
  func.func @transform_1(%arg0: i32, %arg1: i32, %arg2: i32) -> (i32, i32, i32) {
    %c0_i32 = arith.constant 0 : i32
    %c0_i32_0 = arith.constant 0 : i32
    %c0_i32_1 = arith.constant 0 : i32
    return %arg0, %c0_i32, %c0_i32_0 : i32, i32, i32
  }
  func.func @transform_2(%arg0: i32, %arg1: i32, %arg2: i32) -> (i32, i32, i32) {
    %c0_i32 = arith.constant 0 : i32
    %c0_i32_0 = arith.constant 0 : i32
    %c0_i32_1 = arith.constant 0 : i32
    return %arg0, %c0_i32, %c0_i32_0 : i32, i32, i32
  }
  func.func @transform_3(%arg0: i32, %arg1: i32, %arg2: i32) -> (i32, i32, i32) {
    %c0_i32 = arith.constant 0 : i32
    %c0_i32_0 = arith.constant 0 : i32
    %c0_i32_1 = arith.constant 0 : i32
    return %arg2, %c0_i32, %c0_i32_0 : i32, i32, i32
  }
  func.func @transform_4(%arg0: i32, %arg1: i32, %arg2: i32) -> (i32, i32, i32) {
    %c0_i32 = arith.constant 0 : i32
    %c0_i32_0 = arith.constant 0 : i32
    %c0_i32_1 = arith.constant 0 : i32
    return %arg2, %c0_i32, %c0_i32_0 : i32, i32, i32
  }
  func.func @transform_5(%arg0: i32, %arg1: i32, %arg2: i32) -> (i32, i32, i32) {
    %c0_i32 = arith.constant 0 : i32
    %c0_i32_0 = arith.constant 0 : i32
    %c0_i32_1 = arith.constant 0 : i32
    return %arg2, %c0_i32, %c0_i32_0 : i32, i32, i32
  }
  func.func @transform_6(%arg0: i32, %arg1: i32, %arg2: i32) -> (i32, i32) {
    %c0_i32 = arith.constant 0 : i32
    %c0_i32_0 = arith.constant 0 : i32
    %c0_i32_1 = arith.constant 0 : i32
    return %c0_i32, %c0_i32_0 : i32, i32
  }
  func.func @transform_7(%arg0: i32, %arg1: i32, %arg2: i32) -> (i32, i32, i32) {
    %c0_i32 = arith.constant 0 : i32
    %c0_i32_0 = arith.constant 0 : i32
    return %arg0, %arg1, %c0_i32 : i32, i32, i32
  }
}

</mosaic_0001>

<bundles_post_ra>
// kernel: tpu_custom_call.1
= control target key start
LH: loop header
LB: loop body
LE: loop exit
PB: predicated region body
PF: predicated region fallthrough
CT: control target
= control target key end

     0   :  { %s1788_s0 = inlined_call_operand.hbm [shape: f32[2,8,32], index: 0, kind: input, shape index: {}]   ;;  %s1789_s1 = inlined_call_operand.hbm [shape: f32[2,8,32], index: 1, kind: input, shape index: {}]   ;;  %s1790_s2 = inlined_call_operand.hbm [shape: f32[2,8,32], index: 2, kind: input, shape index: {}]   ;;  %s1791_s3 = inlined_call_operand.hbm [shape: f32[4,32,32], index: 3, kind: input, shape index: {}]   ;;  %s1792_s4 = inlined_call_operand.hbm [shape: f32[4,1,32], index: 4, kind: input, shape index: {}]   ;;  %s1793_s5 = inlined_call_operand.hbm [shape: f32[4,32,32], index: 5, kind: input, shape index: {}]   ;;  %s1794_s6 = inlined_call_operand.vmem [shape: f32[1,32], index: 6, kind: input, shape index: {}]   ;;  %s1795_s7 = inlined_call_operand.hbm [shape: f32[2,8,32], index: 7, kind: output, shape index: {}]  }
   0x1   :  { %1814 = sst [smem:[#allocation34_spill]] %s1789_s1 }
   0x2   :  { %1815 = sst [smem:[#allocation35_spill]] %s1791_s3 }
   0x3   :  { %1816 = sst [smem:[#allocation36_spill]] %s1794_s6 }
   0x4   :  { %1817 = sst [smem:[#allocation37_spill]] %s1795_s7 }
   0x5   :  { %12 = vsyncpa [#allocation4], 0 }
   0x6   :  { %14 = vsyncpa [#allocation4 + $0x1], 0 }
   0x7   :  { %15 = vsyncpa [#allocation7], 0 }
   0x8   :  { %17 = vsyncpa [#allocation7 + $0x1], 0 }
   0x9   :  { %18 = vsyncpa [#allocation10], 0 }
   0xa   :  { %20 = vsyncpa [#allocation10 + $0x1], 0 }
   0xb   :  { %21 = vsyncpa [#allocation13], 0 }
   0xc   :  { %23 = vsyncpa [#allocation13 + $0x1], 0 }
   0xd   :  { %24 = vsyncpa [#allocation5], 0 }
   0xe   :  { %26 = vsyncpa [#allocation5 + $0x1], 0  ;;  %s1451_s24 = smov 0   ;;  %s1453_s25 = smov 0  }
   0xf   :  { %s1455_s26 = smov 0   ;;  %s1457_s27 = smov 0  }
  0x10   :  { %s1459_s28 = smov 0   ;;  %s1461_s29 = smov 0  }
  0x11   :  { %s1463_s30 = smov 0   ;;  %s1465_s8 = smov 0  }
  0x12   :  { %s1467_s9 = smov 0   ;;  %s1469_s10 = smov 0  }
  0x13   :  { %s1471_s11 = smov 0  }
  0x14 LB: > { %1818 = sst [smem:[#allocation20_spill]] %s1371_s25  ;;  %s1505_s12 = sadd.s32 4294967295, %s1407_s11   ;;  %s1407_s11 = sphi %s1471_s11, %s32_s11   ;;  %s1403_s10 = sphi %s1469_s10, %s1869_s10   ;;  %s1399_s9 = sphi %s1467_s9, %s1876_s9   ;;  %s1395_s8 = sphi %s1465_s8, %s1867_s8   ;;  %s1391_s30 = sphi %s1463_s30, %s1875_s30   ;;  %s1387_s29 = sphi %s1461_s29, %s1874_s29   ;;  %s1383_s28 = sphi %s1459_s28, %s1873_s28   ;;  %s1379_s27 = sphi %s1457_s27, %s1872_s27   ;;  %s1375_s26 = sphi %s1455_s26, %s1871_s26   ;;  %s1371_s25 = sphi %s1453_s25, %s1870_s25   ;;  %s1367_s24 = sphi %s1451_s24, %s1864_s24  }
  0x15   : > { %1819 = sst [smem:[#allocation21_spill]] %s1379_s27  ;;  %s921_s13 = sadd.s32 4294967294, %s1407_s11  }
  0x16   : > { %1820 = sst [smem:[#allocation22_spill]] %s1391_s30  ;;  %p67_p0 = scmp.ne.s32.totalorder %s1387_s29, %s1383_s28 }
  0x17   : > { %1821 = sst [smem:[#allocation23_spill]] %s1395_s8  ;;  %p68_p1 = scmp.eq.s32.totalorder %s1407_s11, 0 }
  0x18   : > { %1822 = sst [smem:[#allocation24_spill]] %s1403_s10  ;;  %p73_p2 = scmp.ne.s32.totalorder %s1383_s28, %s1379_s27 }
  0x19   : > { %1823 = sst [smem:[#allocation25_spill]] %s1505_s12  ;;  %p74_p3 = scmp.eq.s32.totalorder %s1505_s12, 0 }
  0x1a   : > { %p1519_p4 = por %p68_p1, %p67_p0  ;;  %p145_p6 = scmp.ne.s32.totalorder %s1375_s26, %s1371_s25 }
  0x1b   : > { %p1524_p5 = por %p74_p3, %p73_p2  ;;  %p151_p7 = scmp.ne.s32.totalorder %s1371_s25, %s1367_s24 }
  0x1c   : > { %p250_p8 = scmp.eq.s32.totalorder %s1505_s12, 7  ;;  %p1532_p9 = por %p145_p6, %p68_p1 }
  0x1d   : > { %s1825_s18 = scalar_select %p1524_p5, 1, 0 }
  0x1e   : > { %p256_p10 = scmp.eq.s32.totalorder %s921_s13, 7  ;;  %p1536_p11 = por %p151_p7, %p74_p3 }
  0x1f   : > { %1826 = sst [smem:[#allocation26_spill]] %s1825_s18  ;;  %p1543_p12 = por %p250_p8, %p67_p0 }
  0x20   : > { %s1828_s20 = scalar_select %p1536_p11, 1, 0 }
  0x21   : > { %s1830_s21 = scalar_select %p1543_p12, 1, 0 }
  0x22   : > { %1829 = sst [smem:[#allocation27_spill]] %s1828_s20  ;;  %p1547_p13 = por %p256_p10, %p73_p2 }
  0x23   : > { %1831 = sst [smem:[#allocation28_spill]] %s1830_s21  ;;  %p995_p1 = scmp.lt.s32.totalorder %s1407_s11, 8 }
  0x24   : > { %s1832_s22 = scalar_select %p1547_p13, 1, 0 }
  0x25   : > { %s1798_s23 = sand.u32 1, %s1387_s29   ;;  %s1558_s13 = sshll.u32 %s1403_s10, 3 }
  0x26   : > { %1833 = sst [smem:[#allocation29_spill]] %s1832_s22  ;;  %s1555_s24 = sshll.u32 %s1798_s23, 3 }
  0x27   : > { %p1564_p0 = pnand %p995_p1, %p1519_p4  ;;  %s1802_s17 = sand.u32 1, %s1407_s11  }
  0x28   : > { %s1835_s1 = sld [smem:[#allocation34_spill]]  ;;  %s303_s7 = scalar_lea.vmem [#allocation6], %s1555_s24 }
  0x29   : > { %s311_s21 = sshll.u32 %s303_s7, 4  ;;  %s1576_s16 = scalar_lea.sflag [#allocation7], %s1802_s17  ;;  %s312_s21 = int_to_ptr.vmem [resolvable:$true] %s311_s21 }
  0x2a   : > { %p1585_p2 = pnand %p995_p1, %p1532_p9  ;;  %p936_p3 = scmp.ge.s32.totalorder %s1407_s11, 1 }
  0x2b   : > { %p396_p4 = scmp.lt.s32.totalorder %s1407_s11, 9  ;;  %s1597_s22 = sand.u32 1, %s1375_s26  }
  0x2c   : > { %s1840_s3 = sld [smem:[#allocation35_spill]]  ;;  %s1841_s30 = sshll.u32 %s1597_s22, 5 }
  0x2d   : > { %p1591_p6 = pnand %p936_p3, %p396_p4  ;;  %s341_s20 = scalar_lea.vmem [#allocation9], %s1841_s30 }
  0x2e   : > { %s307_s27 = scalar_lea.hbm %s1835_s1, %s1558_s13  ;;  %s349_s25 = sshll.u32 %s341_s20, 4  ;;  %s350_s25 = int_to_ptr.vmem [resolvable:$true] %s349_s25 }
  0x2f   : > { %s309_s23 = sshll.u32 %s307_s27, 4  ;;  %s44_s27 = sadd.s32 1, %s1399_s9  ;;  %s310_s23 = int_to_ptr.hbm [resolvable:$true] %s309_s23 }
  0x30   : > { %978 = dma.hbm_to_vmem [thread:$0]  (!%p1564_p0), %s310_s23, 128, %s312_s21, %s1576_s16  }
  0x31   : > { %p45_p7 = scmp.ge.s32.totalorder %s44_s27, 4  ;;  %s1810_s21 = sshll.u32 %s1399_s9, 5 }
  0x32   : > { %s1839_s23 = sadd.s32 1, %s1403_s10  ;;  %s346_s6 = scalar_lea.hbm %s1840_s3, %s1810_s21 }
  0x33   : > { %s1878_s27 = smov (%p45_p7, %s44_s27), 0  ;;  %s1880_s23 = smov (!%p45_p7, %s1839_s23), %s1403_s10 }
  0x34   : > { %1838 = sst [smem:[#allocation30_spill]] %s1878_s27  ;;  %s135_s17 = ssub.s32 %s1399_s9, %s1878_s27 }
  0x35   : > { %p53_p8 = scmp.ge.s32.totalorder %s1880_s23, 2  ;;  %p136_p9 = scmp.eq.s32.totalorder %s135_s17, 0 }
  0x36   : > { %s347_s19 = sshll.u32 %s346_s6, 4  ;;  %s1843_s12 = sadd.s32 1, %s1375_s26  ;;  %s348_s19 = int_to_ptr.hbm [resolvable:$true] %s347_s19 }
  0x37   : > { %s1882_s23 = smov (%p53_p8, %s1880_s23), 0  ;;  %s1845_s1 = sadd.s32 1, %s1387_s29 }
  0x38   : > { %1842 = sst [smem:[#allocation31_spill]] %s1882_s23  ;;  %s55_s27 = ssub.s32 %s1403_s10, %s1882_s23 }
  0x39   : > { %s1620_s18 = scalar_select %p136_p9, %s1375_s26, %s1843_s12  }
  0x3a   : > { %p58_p10 = scmp.eq.s32.totalorder %s55_s27, 0  ;;  %s1847_s6 = sand.u32 1, %s1407_s11  }
  0x3b   : > { %1844 = sst [smem:[#allocation32_spill]] %s1620_s18  ;;  %s338_s30 = scalar_lea.sflag [#allocation10], %s1847_s6 }
  0x3c   : > { %s1627_s8 = scalar_select %p58_p10, %s1387_s29, %s1845_s1  }
  0x3d   : > { %s1813_s17 = smov 128   ;;  %s1410_s20 = smov 8  }
  0x3e   : > { %1846 = sst [smem:[#allocation33_spill]] %s1627_s8  ;;  %s288_s27 = scalar_lea.hbm %s1788_s0, %s1558_s13 }
  0x3f   : > { %984 = dma.hbm_to_vmem [thread:$0]  (!%p1585_p2), %s348_s19, 512, %s350_s25, %s338_s30, %s1813_s17, %s1813_s17, %s1410_s20  }
  0x40   : > { %s283_s3 = scalar_lea.vmem [#allocation3], %s1555_s24  ;;  %s290_s23 = sshll.u32 %s288_s27, 4  ;;  %s291_s23 = int_to_ptr.hbm [resolvable:$true] %s290_s23 }
  0x41   : > { %s292_s1 = sshll.u32 %s283_s3, 4  ;;  %s1848_s6 = sand.u32 1, %s1387_s29   ;;  %s293_s1 = int_to_ptr.vmem [resolvable:$true] %s292_s1 }
  0x42   : > { %s280_s10 = scalar_lea.sflag [#allocation4], %s1848_s6  ;;  %s326_s25 = scalar_lea.hbm %s1790_s2, %s1558_s13 }
  0x43   : > { %975 = dma.hbm_to_vmem [thread:$0]  (!%p1564_p0), %s291_s23, 128, %s293_s1, %s280_s10  }
  0x44   : > { %s322_s19 = scalar_lea.vmem [#allocation8], %s1555_s24  ;;  %s328_s12 = sshll.u32 %s326_s25, 4  ;;  %s329_s12 = int_to_ptr.hbm [resolvable:$true] %s328_s12 }
  0x45   : > { %s330_s21 = sshll.u32 %s322_s19, 4  ;;  %s365_s6 = scalar_lea.hbm %s1792_s4, %s1399_s9  ;;  %s331_s21 = int_to_ptr.vmem [resolvable:$true] %s330_s21 }
  0x46   : > { %981 = dma.hbm_to_vmem [thread:$0]  (!%p1564_p0), %s329_s12, 128, %s331_s21, %s1576_s16  }
  0x47   : > { %s362_s17 = scalar_lea.vmem [#allocation11], %s1597_s22  ;;  %s367_s23 = sshll.u32 %s365_s6, 4  ;;  %s368_s23 = int_to_ptr.hbm [resolvable:$true] %s367_s23 }
  0x48   : > { %s369_s10 = sshll.u32 %s362_s17, 4  ;;  %s1849_s18 = sshll.u32 %s1399_s9, 5  ;;  %s370_s10 = int_to_ptr.vmem [resolvable:$true] %s369_s10 }
  0x49   : > { %987 = dma.hbm_to_vmem [thread:$0]  (!%p1585_p2), %s368_s23, 16, %s370_s10, %s338_s30  }
  0x4a   : > { %s385_s8 = scalar_lea.hbm %s1793_s5, %s1849_s18  ;;  %s1850_s15 = sshll.u32 %s1597_s22, 5 }
  0x4b   : > { %s386_s1 = sshll.u32 %s385_s8, 4  ;;  %s380_s25 = scalar_lea.vmem [#allocation12], %s1850_s15  ;;  %s387_s1 = int_to_ptr.hbm [resolvable:$true] %s386_s1 }
  0x4c   : > { %s388_s16 = sshll.u32 %s380_s25, 4  ;;  %s377_s19 = scalar_lea.sflag [#allocation13], %s1597_s22  ;;  %s389_s16 = int_to_ptr.vmem [resolvable:$true] %s388_s16 }
  0x4d   : > { %s1851_s17 = smov 128   ;;  %400 = sbr.rel (%p1591_p6) target bundleno = 941 (0x3ad), region = 48 }
  0x4e   : > { %990 = dma.hbm_to_vmem [thread:$0]  (!%p1585_p2), %s387_s1, 512, %s389_s16, %s377_s19, %s1851_s17, %s1851_s17, %s1410_s20  }
  0x4f   : > { %s1676_s21 = sand.u32 (!%p1591_p6), 1, %s1383_s28  }
  0x50   : > { %s1679_s12 = sshll.u32 (!%p1591_p6), %s1676_s21, 3  ;;  %s403_s3 = scalar_lea.sflag (!%p1591_p6), [#allocation4], %s1676_s21 }
  0x51   : > { %s406_s27 = scalar_lea.vmem (!%p1591_p6), [#allocation3], %s1679_s12 }
  0x52   : > { %1346 = dma.done.wait (%p1524_p5), %s403_s3, 128  }
  0x53   : > { %1348 = vsyncadd (%p1524_p5), %s403_s3, 4294967168  ;;  %s1853_s14 = sld [smem:[#allocation25_spill]]  ;;  %s416_s20 = scalar_lea.vmem [#allocation6], %s1679_s12 }
  0x59   : > { %s412_s7 = sand.u32 1, %s1853_s14  }
  0x5a   : > { %s413_s22 = scalar_lea.sflag [#allocation7], %s412_s7 }
  0x5b   : > { %1350 = dma.done.wait (%p1524_p5), %s413_s22, 256  }
  0x5c   : > { %1352 = vsyncadd (%p1524_p5), %s413_s22, 4294967040  ;;  %s1854_s6 = sld [smem:[#allocation20_spill]]  ;;  %s426_s24 = scalar_lea.vmem [#allocation8], %s1679_s12 }
  0x5d   : > { %s433_s13 = scalar_lea.sflag [#allocation10], %s412_s7 }
  0x62   : > { %s1694_s23 = sand.u32 1, %s1854_s6  }
  0x63   : > { %s940_s18 = sshll.u32 %s1694_s23, 5 }
  0x64   : > { %s436_s8 = scalar_lea.vmem [#allocation9], %s940_s18 }
  0x65   : > { %1354 = dma.done.wait (%p1536_p11), %s433_s13, 528  }
  0x66   : > { %1356 = vsyncadd (%p1536_p11), %s433_s13, 4294966768  ;;  %s445_s1 = scalar_lea.vmem [#allocation11], %s1694_s23  ;;  %s452_s15 = scalar_lea.sflag [#allocation13], %s1694_s23 }
  0x67   : > { %s1704_s25 = scalar_lea.vmem [#allocation12], %s940_s18 }
  0x68   : > { %1358 = dma.done.wait (%p1536_p11), %s452_s15, 512  }
  0x69   : > { %1360 = vsyncadd (%p1536_p11), %s452_s15, 4294966784  ;;  %v514_v0 = vld [vmem:[%s436_s8 + $0x18] sm:$0xff]  ;;  %v513_v1 = vld [vmem:[%s436_s8 + $0x10] sm:$0xff]  ;;  %vm520_vm0 = vcmask 261120   ;;  %vm619_vm1 = vcmask 64512   ;;  %s510_s16 = scalar_lea.vmem [#allocation14], %s1679_s12 }
  0x6a   : > { %560 = vmatpush.msra.mxu1 %v514_v0  ;;  %536 = vmatpush.msra.mxu0 %v514_v0  ;;  %v512_v2 = vld [vmem:[%s436_s8 + $0x8] sm:$0xff]  ;;  %v511_v3 = vld [vmem:[%s436_s8] sm:$0xff]  ;;  %v516_v5 = vld [vmem:[%s406_s27] sm:$0xff]  ;;  %s1856_s19 = sld [smem:[#allocation22_spill]] }
  0x6b   : > { %584 = vmatpush.msra.mxu2 %v514_v0  ;;  %v544_v4 = vld [vmem:[%s416_s20] sm:$0xff]  ;;  %v568_v14 = vld [vmem:[%s426_s24] sm:$0xff] }
  0x6c   : > { %561 = vmatpush.msra.mxu1 %v513_v1  ;;  %537 = vmatpush.msra.mxu0 %v513_v1  ;;  %v1087_v6 = vld [vmem:[%s445_s1] ss:$0 sm:$0xff]  ;;  %v670_v22 = vld [vmem:[%s1704_s25 + $0x18] sm:$0xff]  ;;  %v669_v23 = vld [vmem:[%s1704_s25 + $0x10] sm:$0xff] }
  0x6d   : > { %585 = vmatpush.msra.mxu2 %v513_v1  ;;  %v668_v24 = vld [vmem:[%s1704_s25 + $0x8] sm:$0xff]  ;;  %v667_v25 = vld [vmem:[%s1704_s25] sm:$0xff] }
  0x6e   : > { %562 = vmatpush.msra.mxu1 %v512_v2  ;;  %538 = vmatpush.msra.mxu0 %v512_v2 }
  0x6f   : > { %586 = vmatpush.msra.mxu2 %v512_v2 }
  0x70   : > { %563 = vmatpush.msra.mxu1 %v511_v3  ;;  %539 = vmatpush.msra.mxu0 %v511_v3  ;;  %p950_p5 = scmp.ne.s32.totalorder %s1856_s19, 0 }
  0x71   : > { %944 = vmatmul.msk.f32.vlgmr.msra.gmra.mxu1 %vm520_vm0, %v544_v4  ;;  %943 = vmatmul.msk.f32.vlgmr.msra.gmra.mxu0 %vm520_vm0, %v516_v5  ;;  %s1857_s3 = sld [smem:[#allocation36_spill]] (!%p950_p5) }
  0x72   : > { %587 = vmatpush.msra.mxu2 %v511_v3  ;;  %686 = vmatpush.msrb.mxu0 %v670_v22 }
  0x73   : > { %945 = vmatmul.msk.f32.vlgmr.msra.gmra.mxu2 %vm520_vm0, %v568_v14 }
  0x74   : > { %687 = vmatpush.msrb.mxu0 %v669_v23 }
  0x76   : > { %688 = vmatpush.msrb.mxu0 %v668_v24 }
  0x78   : > { %689 = vmatpush.msrb.mxu0 %v667_v25 }
  0xee   : > { %v565_v7 = vpop.f32.mrf.mxu1  ;;  %v541_v8 = vpop.f32.mrf.mxu0 }
  0xef   : > { %v566_v9 = vadd.f32 %v1087_v6, %v565_v7  ;;  %v542_v10 = vadd.f32 %v1087_v6, %v541_v8 }
  0xf1   : > { %946 = vmatpush.xpose.msk.msra.mxu3 %vm520_vm0, %v566_v9 }
  0xf4   : > { %947 = vmatmul.msk.f32.vlgmr.msra.gmra.mxu3 %vm520_vm0, %v542_v10 }
  0xf6   : > { %v589_v20 = vpop.f32.mrf.mxu2 }
  0xf7   : > { %v590_v21 = vadd.f32 %v1087_v6, %v589_v20 }
  0xf9   : > { %662 = vmatpush.msrb.mxu3 %v590_v21 }
 0x177   : > { %v615_v11 = vpop.f32.mrf.mxu3 }
 0x178   : > { %v618_v12 = vmul.f32 0.17677669, %v615_v11 }
 0x17a   : > { %v620_v13 = vsel %vm619_vm1, %v618_v12, -inf }
 0x17b   : > { %621 = vmax.xlane.f32.xlu0 %v620_v13 }
 0x1ee   : > { %v622_v15 = vpop.xlane.xlu0 %621 }
 0x1ef   : > { %v623_v16 = vsub.f32 %v618_v12, %v622_v15 }
 0x1f1   : > { %v624_v17 = vmul.f32 1.442695, %v623_v16 }
 0x1f3   : > { %1088 = vpow2.f32 %v624_v17 }
 0x1f9   : > { %v1089_v18 = vpop.eup %1088 }
 0x1fa   : > { %v626_v19 = vsel %vm619_vm1, %v1089_v18, 0.0 }
 0x1fb   : > { %627 = vadd.xlane.f32.xlu0 %v626_v19 }
 0x26e   : > { %v628_v26 = vpop.xlane.xlu0 %627 }
 0x26f   : > { %1090 = vrcp.f32 %v628_v26  ;;  %v640_v30 = vand.u32 2147483648, %v628_v26  ;;  %v638_v32 = vand.u32 2147483647, %v628_v26  ;;  %vm634_vm3 = vweird.f32 %v628_v26 }
 0x271   : > { %v641_v34 = vor.u32 1.1754944e-38, %v640_v30  ;;  %vm639_vm5 = vcmp.eq.f32.partialorder %v638_v32, 8.507059e+37 }
 0x275   : > { %v1091_v27 = vpop.eup %1090 }
 0x276   : > { %v630_v28 = vmul.f32 %v1091_v27, %v628_v26  ;;  %vm635_vm2 = vweird.f32 %v1091_v27 }
 0x277   : > { %vm636_vm4 = vmor %vm634_vm3, %vm635_vm2 }
 0x278   : > { %v631_v29 = vsub.f32 1.0, %v630_v28 }
 0x27a   : > { %v632_v31 = vmul.f32 %v1091_v27, %v631_v29 }
 0x27c   : > { %v633_v33 = vadd.f32 %v1091_v27, %v632_v31 }
 0x27e   : > { %v637_v35 = vsel %vm636_vm4, %v1091_v27, %v633_v33 }
 0x27f   : > { %v642_v36 = vsel %vm639_vm5, %v641_v34, %v637_v35 }
 0x280   : > { %v643_v37 = vmul.f32 %v1089_v18, %v642_v36 }
 0x282   : > { %948 = vmatmul.msk.f32.vlgmr.msrb.gmra.mxu3 %vm619_vm1, %v643_v37 }
 0x305   : > { %v664_v38 = vpop.f32.mrf.mxu3 }
 0x306   : > { %949 = vmatmul.msk.f32.vlgmr.msrb.gmra.mxu0 %vm520_vm0, %v664_v38 }
 0x37f   : > { %697 = sbr.rel (%p950_p5) target bundleno = 902 (0x386), region = 76 }
 0x383   : > { %v691_v39 = vpop.f32.mrf.mxu0 }
 0x384   : > { %v1092_v40 = vld [vmem:[%s1857_s3] ss:$0 sm:$0xff] }
 0x385   : > { %702 = vst.msk [vmem:[#allocation2] sm:$0xff] %vm520_vm0, %v1092_v40 }
 0x386 PF: > { %s1858_s27 = sld [smem:[#allocation22_spill]] }
 0x38c   : > { %v703_v41 = vld [vmem:[#allocation2] sm:$0xff]  ;;  %p951_p11 = scmp.ne.s32.totalorder %s1858_s27, 3 }
 0x38d   : > { %v704_v42 = vadd.f32 %v703_v41, %v691_v39 }
 0x38e   : > { %709 = sbr.rel (%p951_p11) target bundleno = 920 (0x398), region = 80 }
 0x38f   : > { %705 = vst.msk [vmem:[#allocation2] sm:$0xff] %vm520_vm0, %v704_v42 }
 0x396   : > { %v710_v43 = vld [vmem:[#allocation2] sm:$0xff] }
 0x397   : > { %711 = vst.msk [vmem:[%s510_s16] sm:$0xff] %vm520_vm0, %v710_v43 }
 0x398 PF: > { %s1859_s12 = sld [smem:[#allocation23_spill]]  ;;  %s726_s23 = sshll.u32 %s510_s16, 4  ;;  %s727_s23 = int_to_ptr.vmem [resolvable:$true] %s726_s23 }
 0x399   : > { %s1861_s6 = sld [smem:[#allocation37_spill]]  ;;  %s713_s24 = scalar_lea.sflag [#allocation5], %s1676_s21 }
 0x39e   : > { %s953_s7 = sshll.u32 %s1859_s12, 3 }
 0x39f   : > { %s724_s10 = scalar_lea.hbm %s1861_s6, %s953_s7  ;;  %s1293_s25 = scalar_lea.hbm %s1861_s6, 16 }
 0x3a0   : > { %s728_s18 = sshll.u32 %s724_s10, 4  ;;  %s729_s18 = int_to_ptr.hbm [resolvable:$true] %s728_s18 }
 0x3a1   : > { %s1287_s13 = sshra.s32 %s729_s18, 4  ;;  %s1288_s13 = int_to_ptr.hbm [resolvable:$true] %s1287_s13 }
 0x3a2   : > { %s1289_s8 = scalar_lea.hbm %s1288_s13, 8  ;;  %p1294_p3 = scmp.lt.s32.totalorder %s1288_s13, %s1861_s6 }
 0x3a3   : > { %p1290_p1 = scmp.ne.s32.totalorder %s1288_s13, %s1289_s8  ;;  %p1295_p4 = scmp.lt.s32.totalorder %s1293_s25, %s1289_s8 }
 0x3a5   : > { %p1291_p0 = pnand %p1290_p1, %p1543_p12  ;;  %p1296_p6 = por %p1295_p4, %p1294_p3 }
 0x3a7   : > { %p1292_p2 = pneg %p1291_p0 }
 0x3a9   : > { %p1297_p7 = pnand %p1296_p6, %p1292_p2 }
 0x3ab   : > { %1300 = shalt.err (!%p1297_p7)
}
 0x3ac   : > { %970 = dma.vmem_to_hbm [thread:$0]  (%p1543_p12), %s727_s23, 128, %s729_s18, %s713_s24  }
 0x3ad PF: > { %s1862_s21 = sld [smem:[#allocation21_spill]]  ;;  %p996_p8 = scmp.ge.s32.totalorder %s1407_s11, 2 }
 0x3af   : > { %p992_p9 = pnand %p996_p8, %p1547_p13 }
 0x3b1   : > { %p993_p10 = pneg %p992_p9 }
 0x3b3   : > { %s740_s30 = sand.u32 1, %s1862_s21  }
 0x3b4   : > { %s741_s3 = scalar_lea.sflag [#allocation5], %s740_s30 }
 0x3b5   : > { %1362 = dma.done.wait (%p993_p10), %s741_s3, 128  }
 0x3b6   : > { %1364 = vsyncadd (%p993_p10), %s741_s3, 4294967168  ;;  %s32_s11 = sadd.s32 1, %s1407_s11   ;;  %s1864_s24 = sld [smem:[#allocation20_spill]] }
 0x3b7   : > { %p29_p5 = scmp.ge.s32.totalorder %s32_s11, 10   ;;  %s1865_s27 = sld [smem:[#allocation32_spill]] }
 0x3b8   : > { %s1866_s12 = sld [smem:[#allocation33_spill]]  ;;  %s1870_s25 = smov %s1375_s26 }
 0x3b9   : > { %s1867_s8 = sld [smem:[#allocation24_spill]]  ;;  %s1875_s30 = smov %s1399_s9 }
 0x3ba   : > { %s1868_s14 = sld [smem:[#allocation30_spill]] }
 0x3bb   : > { %s1869_s10 = sld [smem:[#allocation31_spill]] }
 0x3bc   :  { %31 = sbr.rel (!%p29_p5) target bundleno = 20 (0x14), region = 162 }
 0x3bd   : > { %s1871_s26 = smov %s1865_s27  ;;  %s1872_s27 = smov %s1383_s28 }
 0x3be   : > { %s1873_s28 = smov %s1387_s29  ;;  %s1874_s29 = smov %s1866_s12 }
 0x3c0   : > { %s1876_s9 = smov %s1868_s14 }
 0x3c1   :  { %747 = vsyncpa [#allocation4], 1 }
 0x3c2   :  { %749 = vsyncpa [#allocation4 + $0x1], 1 }
 0x3c3   :  { %750 = vsyncpa [#allocation7], 1 }
 0x3c4   :  { %752 = vsyncpa [#allocation7 + $0x1], 1 }
 0x3c5   :  { %753 = vsyncpa [#allocation10], 1 }
 0x3c6   :  { %755 = vsyncpa [#allocation10 + $0x1], 1 }
 0x3c7   :  { %756 = vsyncpa [#allocation13], 1 }
 0x3c8   :  { %758 = vsyncpa [#allocation13 + $0x1], 1 }
 0x3c9   :  { %759 = vsyncpa [#allocation5], 1 }
 0x3ca   :  { %761 = vsyncpa [#allocation5 + $0x1], 1 }

</bundles_post_ra>
